<compile_context>
chip_gen: v7x
topology: tpu7x:2x2x1
jax: 0.10.0
libtpu: 0.0.40
codegen_flags: <defaults>
</compile_context>

<pallas_src>
import numpy as np

import jax
import jax.numpy as jnp
from jax.experimental import pallas as pl
from jax.experimental.pallas import tpu as pltpu


def critic_kernel(obs_ref, w1_ref, b1_ref, w2_ref, b2_ref, out_ref):
    # obs tile: (TB, D) in the streaming dtype; weights resident in VMEM.
    # fc1 on the MXU, f32 accumulation.
    h = jnp.dot(obs_ref[...], w1_ref[...],
                preferred_element_type=jnp.float32)              # (TB, D) f32

    # Bias + tanh in f32: VPU add + EUP tanh (v5e has no bf16 VPU/EUP).
    # TODO(synk): on v7x with bf16 streaming, re-check whether the single EUP
    # becomes co-limiting; if so, do tanh in bf16 or a short VALU polynomial.
    h = jnp.tanh(h + b1_ref[...])                                # (TB, D) f32

    # fc2: contract D of the (1, D) weight row against D of h (w2 . h^T) ->
    # lane-dense (1, TB) value row. Avoids a degenerate (D, 1) operand and a
    # masked (TB, 1) column store. (Verified layout intent; check with
    # pl.lower_as_mlir if suspicious of an XLU relayout.)
    v = jax.lax.dot_general(
        w2_ref[...], h,
        dimension_numbers=(((1,), (1,)), ((), ())),
        preferred_element_type=jnp.float32)                      # (1, TB)

    out_ref[...] = (v + b2_ref[0]).astype(out_ref.dtype)         # lane-dense store


def critic_forward(obs, w1, b1, w2, b2, *, tb_max=512, stream_dtype=jnp.bfloat16):
    """Critic forward.

    obs: (B, D)
    w1:  (D, D) fc1 weight stored as (in, out)   (i.e. PyTorch W1^T)
    b1:  (D,)   fc1 bias
    w2:  (D,)   fc2 weight (in-major; single output unit)
    b2:  (1,)   fc2 bias
    Returns values of shape (B, 1), f32.
    """
    B, D = obs.shape
    itemsize = int(np.dtype(stream_dtype).itemsize)

    obs = obs.astype(stream_dtype)                      # streamed operand
    w1 = jnp.asarray(w1).astype(stream_dtype)           # resident MXU operand
    b1_row = jnp.asarray(b1, jnp.float32).reshape(1, D)
    w2_row = jnp.asarray(w2, jnp.float32).reshape(1, D)
    b2_vec = jnp.asarray(b2, jnp.float32).reshape(1)

    # ---- Batch tiling (no wrapper-side pad) --------------------------------
    # Single full block for trivially small B; otherwise a multiple-of-128
    # tile (legal lane-dense output block and bf16 input sublane tile) chosen
    # so that there are >= 2 grid blocks (v7x megacore + DMA double-buffering)
    # and at most tb_max rows per block.
    if B <= 128:
        tb = B                                   # block == full array dims
    else:
        tb = min(int(tb_max), 128 * pl.cdiv(pl.cdiv(B, 2), 128))
    n_blk = pl.cdiv(B, tb)

    # ---- VMEM budget --------------------------------------------------------
    w1_bytes = D * D * itemsize
    vmem_bytes = (2 * tb * D * itemsize          # double-buffered obs tiles
                  + 2 * tb * 4                   # double-buffered out rows
                  + 2 * w1_bytes                 # w1 (worst case 2 buffers)
                  + 4 * 2 * D * 4                # b1 / w2 rows (+ slack)
                  + (2 << 20))                   # Mosaic internal scratch
    vmem_limit = None
    if vmem_bytes > (16 << 20):                  # beyond the smallest default scoped VMEM
        try:
            cap = int(0.7 * pltpu.get_tpu_info().vmem_capacity_bytes)
        except Exception:  # pragma: no cover - conservative fallback
            cap = 44 << 20                       # safe under v7x's 64 MiB physical VMEM
        vmem_limit = int(min(vmem_bytes, cap))

    # Resident w1: constant index map keeps it in VMEM across grid steps.
    # Once it is big enough to matter, single-buffer it (the second pipeline
    # buffer is pure waste for a never-changing block).
    if w1_bytes > (8 << 20):
        w1_spec = pl.BlockSpec((D, D), lambda i: (0, 0), pipeline_mode=pl.Buffered(1))
    else:
        w1_spec = pl.BlockSpec((D, D), lambda i: (0, 0))
    # TODO(synk): if D grows past ~2000 (v7x, f32) / ~2800 (v5e/v6e) — double
    # for bf16 — tile the K axis of w1 with a second "arbitrary" grid dim
    # instead of holding the full weight resident.

    cost = pl.CostEstimate(
        flops=2 * B * D * D + 2 * B * D,
        transcendentals=B * D,
        bytes_accessed=B * D * itemsize + D * D * itemsize + (2 * D + 2) * 4 + B * 4,
    )

    out = pl.pallas_call(
        critic_kernel,
        out_shape=jax.ShapeDtypeStruct((1, B), jnp.float32),
        grid=(n_blk,),
        in_specs=[
            pl.BlockSpec((tb, D), lambda i: (i, 0)),            # obs: streamed over B
            w1_spec,                                            # w1: resident
            pl.BlockSpec((1, D), lambda i: (0, 0)),             # b1: resident (f32)
            pl.BlockSpec((1, D), lambda i: (0, 0)),             # w2 row: resident (f32)
            pl.BlockSpec(memory_space=pltpu.MemorySpace.SMEM),  # b2: SMEM scalar
        ],
        out_specs=pl.BlockSpec((1, tb), lambda i: (0, i)),      # lane-dense value row
        compiler_params=pltpu.CompilerParams(
            dimension_semantics=("parallel",),                  # v7x: both TCs
            vmem_limit_bytes=vmem_limit,
        ),
        cost_estimate=cost,
    )(obs, w1, b1_row, w2_row, b2_vec)

    return out[0, :B].reshape(B, 1)


def init_params(key, latent_dim):
    """Deterministic parameter init (PyTorch-Linear-style uniform bounds)."""
    k1, k2, k3, k4 = jax.random.split(key, 4)
    bound = 1.0 / jnp.sqrt(latent_dim)
    # fc1: PyTorch weight is (out, in); store transposed as (in, out) = (D, D)
    w1 = jax.random.uniform(k1, (latent_dim, latent_dim), jnp.float32, -bound, bound)
    b1 = jax.random.uniform(k2, (latent_dim,), jnp.float32, -bound, bound)
    # fc2: PyTorch weight is (1, in); store as (in,) = (D,)
    w2 = jax.random.uniform(k3, (latent_dim,), jnp.float32, -bound, bound)
    b2 = jax.random.uniform(k4, (1,), jnp.float32, -bound, bound)
    return w1, b1, w2, b2


def _reference(obs, w1, b1, w2, b2, cast_dtype=None):
    """Pure-JAX reference; optionally mimics the bf16 input rounding."""
    if cast_dtype is not None:
        obs = obs.astype(cast_dtype).astype(jnp.float32)
        w1 = w1.astype(cast_dtype).astype(jnp.float32)
    h = jnp.tanh(obs @ w1 + b1[None, :])
    return h @ w2.reshape(-1, 1) + b2.reshape(1, 1)


if __name__ == "__main__":
    key = jax.random.PRNGKey(0)
    k_obs, k_par, k_obs2, k_par2 = jax.random.split(key, 4)

    # 1) Small-shape check, exact f32 streaming path (single full block).
    latent_dim, batch = 32, 16
    obs = jax.random.normal(k_obs, (batch, latent_dim), jnp.float32)
    w1, b1, w2, b2 = init_params(k_par, latent_dim)
    value = jax.block_until_ready(
        critic_forward(obs, w1, b1, w2, b2, stream_dtype=jnp.float32))
    ref = _reference(obs, w1, b1, w2, b2)
    assert value.shape == (batch, 1)
    assert jnp.allclose(value, ref, atol=1e-4, rtol=1e-4), "f32 path mismatch"

    # 2) bf16 streaming on the same small shape (compare vs bf16-rounded ref).
    value_bf = jax.block_until_ready(critic_forward(obs, w1, b1, w2, b2))
    ref_bf = _reference(obs, w1, b1, w2, b2, cast_dtype=jnp.bfloat16)
    assert jnp.allclose(value_bf, ref_bf, atol=2e-3, rtol=2e-3), "bf16 path mismatch"

    # 3) Multi-block grid + ragged (masked) last block, bf16 streaming.
    #    B=300 -> tb=256, n_blk=2 (exercises the un-padded tail handling).
    latent_dim2, batch2 = 64, 300
    obs2 = jax.random.normal(k_obs2, (batch2, latent_dim2), jnp.float32)
    w1b, b1b, w2b, b2b = init_params(k_par2, latent_dim2)
    value2 = jax.block_until_ready(critic_forward(obs2, w1b, b1b, w2b, b2b))
    ref2 = _reference(obs2, w1b, b1b, w2b, b2b, cast_dtype=jnp.bfloat16)
    assert value2.shape == (batch2, 1)
    assert jnp.allclose(value2, ref2, atol=2e-3, rtol=2e-3), "multi-block mismatch"
    assert jnp.all(jnp.isfinite(value2)), "non-finite values in ragged-tail path"

    print("KERNEL_OK")
</pallas_src>

<mosaic_0001>
module attributes {stable_mosaic.version = 11 : i64} {
  func.func @critic_kernel(%arg0: i32, %arg1: memref<16x32xf32, #tpu.memory_space<vmem>>, %arg2: memref<32x32xf32, #tpu.memory_space<vmem>>, %arg3: memref<1x32xf32, #tpu.memory_space<vmem>>, %arg4: memref<1x32xf32, #tpu.memory_space<vmem>>, %arg5: memref<1xf32, #tpu.memory_space<smem>>, %arg6: memref<1x16xf32, #tpu.memory_space<vmem>>) attributes {dimension_semantics = [#tpu.dimension_semantics<parallel>], iteration_bounds = array<i64: 1>, scalar_prefetch = 0 : i64, scratch_operands = 0 : i64, tpu.core_type = #tpu.core_type<tc>, window_params = [{transform_indices = @transform_0, window_bounds = array<i64: 16, 32>}, {pipeline_mode = #tpu.pipeline_mode<synchronous>, transform_indices = @transform_1, window_bounds = array<i64: 32, 32>}, {pipeline_mode = #tpu.pipeline_mode<synchronous>, transform_indices = @transform_2, window_bounds = array<i64: 1, 32>}, {pipeline_mode = #tpu.pipeline_mode<synchronous>, transform_indices = @transform_3, window_bounds = array<i64: 1, 32>}, {transform_indices = @transform_4, window_bounds = array<i64: 1>}, {transform_indices = @transform_5, window_bounds = array<i64: 1, 16>}]} {
    %c0 = arith.constant 0 : index
    %c0_0 = arith.constant 0 : index
    %0 = vector.load %arg1[%c0, %c0_0] : memref<16x32xf32, #tpu.memory_space<vmem>>, vector<16x32xf32>
    %c0_1 = arith.constant 0 : index
    %c0_2 = arith.constant 0 : index
    %1 = vector.load %arg2[%c0_1, %c0_2] : memref<32x32xf32, #tpu.memory_space<vmem>>, vector<32x32xf32>
    %cst = arith.constant dense<0.000000e+00> : vector<16x32xf32>
    %2 = tpu.matmul %0, %1, %cst {dimension_numbers = #tpu.dot_dimension_numbers<[1], [0], [0], [1], [0, 0, 1, 1], [], []>} : vector<16x32xf32>, vector<32x32xf32>, vector<16x32xf32> -> vector<16x32xf32>
    %c0_3 = arith.constant 0 : index
    %c0_4 = arith.constant 0 : index
    %3 = vector.load %arg3[%c0_3, %c0_4] : memref<1x32xf32, #tpu.memory_space<vmem>>, vector<1x32xf32>
    %4 = vector.broadcast %3 : vector<1x32xf32> to vector<16x32xf32>
    %5 = arith.addf %2, %4 : vector<16x32xf32>
    %6 = math.tanh %5 : vector<16x32xf32>
    %c0_5 = arith.constant 0 : index
    %c0_6 = arith.constant 0 : index
    %7 = vector.load %arg4[%c0_5, %c0_6] : memref<1x32xf32, #tpu.memory_space<vmem>>, vector<1x32xf32>
    %cst_7 = arith.constant dense<0.000000e+00> : vector<1x16xf32>
    %8 = tpu.matmul %7, %6, %cst_7 {dimension_numbers = #tpu.dot_dimension_numbers<[1], [1], [0], [0], [0, 0, 1, 0], [], []>} : vector<1x32xf32>, vector<16x32xf32>, vector<1x16xf32> -> vector<1x16xf32>
    %c0_8 = arith.constant 0 : index
    %9 = memref.load %arg5[%c0_8] : memref<1xf32, #tpu.memory_space<smem>>
    %10 = vector.broadcast %9 : f32 to vector<1x16xf32>
    %11 = arith.addf %8, %10 : vector<1x16xf32>
    %c0_9 = arith.constant 0 : index
    %c0_10 = arith.constant 0 : index
    %12 = vector.load %arg6[%c0_9, %c0_10] : memref<1x16xf32, #tpu.memory_space<vmem>>, vector<1x16xf32>
    tpu.vector_store %arg6[%c0_9, %c0_10], %11 {strides = array<i32>} : memref<1x16xf32, #tpu.memory_space<vmem>>, vector<1x16xf32>,
    return
  }
  func.func @transform_0(%arg0: i32) -> (i32, i32) {
    %c0_i32 = arith.constant 0 : i32
    %c0_i32_0 = arith.constant 0 : i32
    return %arg0, %c0_i32 : i32, i32
  }
  func.func @transform_1(%arg0: i32) -> (i32, i32) {
    %c0_i32 = arith.constant 0 : i32
    %c0_i32_0 = arith.constant 0 : i32
    %c0_i32_1 = arith.constant 0 : i32
    return %c0_i32, %c0_i32_0 : i32, i32
  }
  func.func @transform_2(%arg0: i32) -> (i32, i32) {
    %c0_i32 = arith.constant 0 : i32
    %c0_i32_0 = arith.constant 0 : i32
    %c0_i32_1 = arith.constant 0 : i32
    return %c0_i32, %c0_i32_0 : i32, i32
  }
  func.func @transform_3(%arg0: i32) -> (i32, i32) {
    %c0_i32 = arith.constant 0 : i32
    %c0_i32_0 = arith.constant 0 : i32
    %c0_i32_1 = arith.constant 0 : i32
    return %c0_i32, %c0_i32_0 : i32, i32
  }
  func.func @transform_4(%arg0: i32) -> i32 {
    %c0_i32 = arith.constant 0 : i32
    %c0_i32_0 = arith.constant 0 : i32
    return %c0_i32 : i32
  }
  func.func @transform_5(%arg0: i32) -> (i32, i32) {
    %c0_i32 = arith.constant 0 : i32
    %c0_i32_0 = arith.constant 0 : i32
    return %c0_i32, %arg0 : i32, i32
  }
}

</mosaic_0001>

<bundles_post_ra>
// kernel: tpu_custom_call.1
= control target key start
LH: loop header
LB: loop body
LE: loop exit
PB: predicated region body
PF: predicated region fallthrough
CT: control target
= control target key end

     0   :  { %11 = vsyncpa [#allocation4], 0  ;;  %s464_s0 = inlined_call_operand.hbm [shape: f32[16,32], index: 0, kind: input, shape index: {}]   ;;  %s465_s1 = inlined_call_operand.hbm [shape: f32[32,32], index: 1, kind: input, shape index: {}]   ;;  %s466_s2 = inlined_call_operand.vmem [shape: f32[1,32], index: 2, kind: input, shape index: {}]   ;;  %s467_s3 = inlined_call_operand.vmem [shape: f32[1,32], index: 3, kind: input, shape index: {}]   ;;  %s468_s4 = inlined_call_operand.<no memory space> [shape: f32[1], index: 4, kind: input, shape index: {}]   ;;  %s469_s5 = inlined_call_operand.hbm [shape: f32[1,16], index: 5, kind: output, shape index: {}]  }
   0x1   :  { %12 = vsyncpa [#allocation7], 0 }
   0x2   :  { %13 = vsyncpa [#allocation5], 0  ;;  %s376_s18 = smov [#allocation3]   ;;  %s304_s22 = scalar_lea.hbm %s464_s0, 256 }
   0x3   :  { %s19_s19 = sshll.u32 %s376_s18, 4  ;;  %p305_p0 = scmp.ne.s32.totalorder %s464_s0, %s304_s22  ;;  %s20_s19 = int_to_ptr.vmem [resolvable:$true] %s19_s19 }
   0x4   :  { %p308_p1 = scmp.lt.u32.totalorder %s304_s22, %s464_s0 }
   0x6   :  { %p310_p2 = pnand %p308_p1, %p305_p0 }
   0x8   :  { %313 = shalt.err (!%p310_p2)
}
   0x9   :  { %s314_s27 = scalar_lea.vmem %s20_s19, 256  ;;  %p319_p4 = scmp.lt.s32.totalorder %s20_s19, %s20_s19 }
   0xa   :  { %p315_p3 = scmp.ne.s32.totalorder %s20_s19, %s314_s27  ;;  %p320_p5 = scmp.lt.s32.totalorder %s314_s27, %s314_s27 }
   0xc   :  { %p321_p6 = por %p320_p5, %p319_p4 }
   0xe   :  { %p322_p7 = pnand %p321_p6, %p315_p3 }
  0x10   :  { %325 = shalt.err (!%p322_p7)
}
  0x11   :  { %s377_s28 = smov 128   ;;  %s378_s29 = smov 8  }
  0x12   :  { %25 = dma.hbm_to_vmem [thread:$0]  %s464_s0, 256, %s20_s19, [#allocation4], %s377_s28, %s377_s28, %s378_s29  }
  0x13   :  { %s379_s7 = smov [#allocation6]   ;;  %s326_s11 = scalar_lea.hbm %s465_s1, 512 }
  0x14   :  { %s31_s8 = sshll.u32 %s379_s7, 4  ;;  %p327_p8 = scmp.ne.s32.totalorder %s465_s1, %s326_s11  ;;  %s32_s8 = int_to_ptr.vmem [resolvable:$true] %s31_s8 }
  0x15   :  { %p330_p9 = scmp.lt.u32.totalorder %s326_s11, %s465_s1 }
  0x17   :  { %p332_p10 = pnand %p330_p9, %p327_p8 }
  0x19   :  { %335 = shalt.err (!%p332_p10)
}
  0x1a   :  { %s336_s16 = scalar_lea.vmem %s32_s8, 512  ;;  %p341_p12 = scmp.lt.s32.totalorder %s32_s8, %s32_s8 }
  0x1b   :  { %p337_p11 = scmp.ne.s32.totalorder %s32_s8, %s336_s16  ;;  %p342_p13 = scmp.lt.s32.totalorder %s336_s16, %s336_s16 }
  0x1d   :  { %p343_p0 = por %p342_p13, %p341_p12 }
  0x1f   :  { %p344_p1 = pnand %p343_p0, %p337_p11 }
  0x21   :  { %347 = shalt.err (!%p344_p1)
}
  0x22   :  { %37 = dma.hbm_to_vmem [thread:$0]  %s465_s1, 512, %s32_s8, [#allocation7], %s377_s28, %s377_s28, %s378_s29  }
  0x23   :  { %370 = dma.done.wait [#allocation4], 256  }
  0x24   :  { %371 = vsyncadd [#allocation4], 4294967040 }
  0x25   :  { %372 = dma.done.wait [#allocation7], 512  }
  0x26   :  { %373 = vsyncadd [#allocation7], 4294966784  ;;  %vm63_vm0 = vcmask 261120   ;;  %v52_v0 = vld [vmem:[#allocation6] sm:$0xff]  ;;  %v53_v1 = vld [vmem:[#allocation6 + $0x8] sm:$0xff]  ;;  %v380_v8 = vmov 0.0|0.0   ;;  %v149_v19 = vstv %s468_s4 }
  0x27   :  { %v54_v2 = vld [vmem:[#allocation6 + $0x10] sm:$0xff]  ;;  %v280_v3 = vpack.c.bf16 %v53_v1, %v52_v0  ;;  %v55_v4 = vld [vmem:[#allocation6 + $0x18] sm:$0xff]  ;;  %288 = vmatprep.subr.bf16.mxu1 %v380_v8  ;;  %vm381_vm1 = vmmov 0   ;;  %v382_v9 = vmov 0.0   ;;  %vm290_vm2 = vmpackc.low %vm63_vm0, %vm63_vm0  ;;  %s383_s22 = smov [#allocation8]   ;;  %vm229_vm3 = vcmask 122880  }
  0x28   :  { %v50_v5 = vld [vmem:[#allocation3] sm:$0xff]  ;;  %v284_v6 = vpack.c.bf16 %v55_v4, %v54_v2  ;;  %v51_v7 = vld [vmem:[#allocation3 + $0x8] sm:$0xff]  ;;  %277 = vmatprep.mubr.msk.f32.mxu1 %vm381_vm1, %v382_v9  ;;  %s237_s23 = sshll.u32 %s383_s22, 4  ;;  %s238_s23 = int_to_ptr.vmem [resolvable:$true] %s237_s23 }
  0x29   :  { %270 = vmatprep.mubr.msk.f32.mxu0 %vm63_vm0, %v50_v5  ;;  %281 = vmatprep.subr.bf16.mxu0 %v280_v3  ;;  %v247_v10 = vld [vmem:[%s466_s2] ss:$0 sm:$0xff]  ;;  %s348_s24 = scalar_lea.vmem %s238_s23, 16  ;;  %s352_s25 = scalar_lea.vmem %s238_s23, 32 }
  0x2a   :  { %283 = vmatpush3.bf16.msra.mxu0 %v280_v3  ;;  %v147_v18 = vld [vmem:[%s467_s3] sm:$0x1]  ;;  %p349_p2 = scmp.ne.s32.totalorder %s238_s23, %s348_s24  ;;  %p353_p3 = scmp.lt.s32.totalorder %s238_s23, %s238_s23 }
  0x2b   :  { %285 = vmatprep.subr.bf16.mxu0 %v284_v6  ;;  %p354_p4 = scmp.lt.s32.totalorder %s352_s25, %s348_s24 }
  0x2d   :  { %p355_p5 = por %p354_p4, %p353_p3 }
  0x2e   :  { %287 = vmatpush3.bf16.msra.mxu0 %v284_v6 }
  0x2f   :  { %p356_p6 = pnand %p355_p5, %p349_p2 }
  0x31   :  { %271 = vmatmul.mubr.msk.f32.vlgmr.msra.gmra.mrb[0].mxu0 %vm63_vm0, %v51_v7 }
 0x104   :  { %v272_v11 = vpop.f32.mrb[0].mxu0 }
 0x105   :  { %v142_v12 = vadd.f32 %v272_v11, %v247_v10  ;;  %v136_v13 = vpop.f32.mrb[1].mxu0 }
 0x106   :  { %v137_v14 = vadd.f32 %v247_v10, %v136_v13 }
 0x107   :  { %300 = vtanh.f32 %v142_v12 }
 0x108   :  { %302 = vtanh.f32 %v137_v14 }
 0x111   :  { %v301_v15 = vpop.eup %300 }
 0x112   :  { %v303_v16 = vpop.eup %302 }
 0x113   :  { %v289_v17 = vpack.c.bf16 %v301_v15, %v303_v16 }
 0x115   :  { %291 = vmatpush3.bf16.xpose.msk.msra.mxu1 %vm290_vm2, %v289_v17 }
 0x11c   :  { %278 = vmatmul.mubr.msk.f32.vlgmr.msra.gmra.mrb[0].mxu1 %vm63_vm0, %v147_v18 }
 0x1ef   :  { %v225_v20 = vpop.f32.mrb[0].mxu1 }
 0x1f0   :  { %v226_v21 = vadd.f32 %v225_v20, %v149_v19  ;;  %v279_v22 = vpop.f32.mrb[1].mxu1 }
 0x1f2   :  { %230 = vst.msk [vmem:[#allocation8] sm:$0x1] %vm229_vm3, %v226_v21 }
 0x1f3   :  { %359 = shalt.err (!%p356_p6)
}
 0x1f4   :  { %s360_s4 = scalar_lea.hbm %s469_s5, 16 }
 0x1f5   :  { %p361_p7 = scmp.ne.s32.totalorder %s469_s5, %s360_s4  ;;  %p364_p8 = scmp.lt.u32.totalorder %s360_s4, %s469_s5 }
 0x1f7   :  { %p366_p9 = pnand %p364_p8, %p361_p7 }
 0x1f9   :  { %369 = shalt.err (!%p366_p9)
}
 0x1fa   :  { %240 = dma.vmem_to_hbm [thread:$0]  %s238_s23, 16, %s469_s5, [#allocation5]  }
 0x1fb   :  { %374 = dma.done.wait [#allocation5], 16  }
 0x1fc   :  { %375 = vsyncadd [#allocation5], 4294967280 }
 0x1fd   :  { %244 = vsyncpa [#allocation4], 1 }
 0x1fe   :  { %245 = vsyncpa [#allocation7], 1 }
 0x1ff   :  { %246 = vsyncpa [#allocation5], 1 }

</bundles_post_ra>
